<compile_context>
chip_gen: v6e
topology: v6e:2x2x1
jax: 0.10.0
libtpu: 0.0.40
codegen_flags: <defaults>
</compile_context>

<pallas_src>
import functools

import jax
import jax.numpy as jnp
from jax.experimental import pallas as pl
from jax.experimental.pallas import tpu as pltpu

_LANE = 1024                       # lane-dense last dim (multiple of 128)
_TILE_BUDGET = 16 * 1024 * 1024    # double-buffered (in + out) bytes per step
_TR_CAP = 2048                     # max rows per block
_VMEM_LIMIT = 32 * 1024 * 1024     # scoped-VMEM limit for the pallas_call


def _cast_kernel(x_ref, o_ref):
    # Load tile, convert dtype on the VPU, store full-lane.
    o_ref[...] = x_ref[...].astype(o_ref.dtype)


def _pick_rows_per_block(rows: int, in_bytes: int, out_bytes: int) -> int:
    """Dtype-aware row-block: fill ~_TILE_BUDGET bytes double-buffered."""
    tr = _TILE_BUDGET // (2 * (in_bytes + out_bytes) * _LANE)
    tr = max(32, min(_TR_CAP, (tr // 32) * 32))
    if rows <= tr:
        if rows >= 64:
            # Guarantee >=2 grid steps so v7x's two TensorCores both stream.
            tr = ((rows + 63) // 64) * 32      # ceil(rows/2) rounded up to 32
        else:
            tr = rows                          # single block == full array
    return tr


def _pallas_cast_2d(x2d: jax.Array, target_dtype, tr: int) -> jax.Array:
    rows, lane = x2d.shape
    in_bytes = x2d.dtype.itemsize
    out_bytes = jnp.dtype(target_dtype).itemsize
    grid = (pl.cdiv(rows, tr),)
    return pl.pallas_call(
        _cast_kernel,
        out_shape=jax.ShapeDtypeStruct((rows, lane), target_dtype),
        grid=grid,
        in_specs=[pl.BlockSpec((tr, lane), lambda i: (i, 0))],
        out_specs=pl.BlockSpec((tr, lane), lambda i: (i, 0)),
        compiler_params=pltpu.CompilerParams(
            dimension_semantics=("parallel",),
            vmem_limit_bytes=_VMEM_LIMIT,
        ),
        cost_estimate=pl.CostEstimate(
            flops=0,
            transcendentals=0,
            bytes_accessed=rows * lane * (in_bytes + out_bytes),
        ),
    )(x2d)


@functools.partial(jax.jit, static_argnames=("target_dtype", "min_pallas_elements"))
def pallas_cast(x: jax.Array, target_dtype, *, min_pallas_elements: int = 65536) -> jax.Array:
    """Cast `x` to `target_dtype` with a tiled, lane-dense Pallas TPU kernel."""
    target_dtype = jnp.dtype(target_dtype)
    orig_shape = x.shape
    total = x.size

    if total == 0:
        return jnp.zeros(orig_shape, target_dtype)
    if x.dtype == target_dtype:
        return x
    if total < min_pallas_elements:
        # Tiny tensors: launch + DMA setup dominates; XLA's fused cast wins.
        return x.astype(target_dtype)

    flat = x.reshape(-1)
    bulk = (total // _LANE) * _LANE       # lane-aligned prefix handled in-kernel
    tail = total - bulk                   # <_LANE ragged remainder

    pieces = []
    if bulk:
        rows = bulk // _LANE
        tr = _pick_rows_per_block(rows, x.dtype.itemsize, target_dtype.itemsize)
        x2d = (flat[:bulk] if tail else flat).reshape(rows, _LANE)
        out2d = _pallas_cast_2d(x2d, target_dtype, tr)
        pieces.append(out2d.reshape(-1))
    if tail:
        # Ragged tail: same rounding semantics (astype) as the kernel body.
        pieces.append(flat[bulk:].astype(target_dtype))

    out_flat = pieces[0] if len(pieces) == 1 else jnp.concatenate(pieces)
    return out_flat.reshape(orig_shape)


if __name__ == "__main__":
    key = jax.random.PRNGKey(0)
    k1, k2, k3 = jax.random.split(key, 3)

    # 1) The module's typical small NCHW input — forced through the Pallas path.
    x_small = jax.random.normal(k1, (2, 4, 16, 16), dtype=jnp.float32) * 10.0
    y = jax.block_until_ready(pallas_cast(x_small, jnp.bfloat16, min_pallas_elements=0))
    assert y.shape == x_small.shape and y.dtype == jnp.bfloat16
    assert jnp.array_equal(y, x_small.astype(jnp.bfloat16)), "bf16 cast mismatch"

    y_i32 = jax.block_until_ready(pallas_cast(x_small, jnp.int32, min_pallas_elements=0))
    assert jnp.array_equal(y_i32, x_small.astype(jnp.int32)), "int32 cast mismatch"

    # 2) Lane-aligned medium input — default threshold path, multi-step grid.
    x_med = jax.random.normal(k2, (4, 8, 64, 64), dtype=jnp.float32)
    y_med = jax.block_until_ready(pallas_cast(x_med, jnp.float16))
    assert y_med.dtype == jnp.float16
    assert jnp.array_equal(y_med, x_med.astype(jnp.float16)), "f16 cast mismatch"

    # 3) Ragged size — exercises bulk-kernel + tail-astype split (no full pad/slice).
    x_rag = jax.random.normal(k3, (2, 4, 100, 33), dtype=jnp.float32)
    y_rag = jax.block_until_ready(pallas_cast(x_rag, jnp.bfloat16, min_pallas_elements=0))
    assert y_rag.shape == x_rag.shape and y_rag.dtype == jnp.bfloat16
    assert jnp.array_equal(y_rag, x_rag.astype(jnp.bfloat16)), "ragged cast mismatch"

    # 4) Tiny-input fast path (pure astype fallback).
    y_tiny = jax.block_until_ready(pallas_cast(x_small, jnp.float16))
    assert jnp.array_equal(y_tiny, x_small.astype(jnp.float16)), "fallback cast mismatch"

    print("KERNEL_OK")
</pallas_src>

<mosaic_0001>
module attributes {stable_mosaic.version = 11 : i64} {
  func.func @_cast_kernel(%arg0: i32, %arg1: memref<2x1024xf32, #tpu.memory_space<vmem>>, %arg2: memref<2x1024xbf16, #tpu.memory_space<vmem>>) attributes {dimension_semantics = [#tpu.dimension_semantics<parallel>], iteration_bounds = array<i64: 1>, scalar_prefetch = 0 : i64, scratch_operands = 0 : i64, tpu.core_type = #tpu.core_type<tc>, window_params = [{transform_indices = @transform_0, window_bounds = array<i64: 2, 1024>}, {transform_indices = @transform_1, window_bounds = array<i64: 2, 1024>}]} {
    %c0 = arith.constant 0 : index
    %c0_0 = arith.constant 0 : index
    %0 = vector.load %arg1[%c0, %c0_0] : memref<2x1024xf32, #tpu.memory_space<vmem>>, vector<2x1024xf32>
    %1 = arith.truncf %0 : vector<2x1024xf32> to vector<2x1024xbf16>
    %c0_1 = arith.constant 0 : index
    %c0_2 = arith.constant 0 : index
    %2 = vector.load %arg2[%c0_1, %c0_2] : memref<2x1024xbf16, #tpu.memory_space<vmem>>, vector<2x1024xbf16>
    tpu.vector_store %arg2[%c0_1, %c0_2], %1 {strides = array<i32>} : memref<2x1024xbf16, #tpu.memory_space<vmem>>, vector<2x1024xbf16>,
    return
  }
  func.func @transform_0(%arg0: i32) -> (i32, i32) {
    %c0_i32 = arith.constant 0 : i32
    %c0_i32_0 = arith.constant 0 : i32
    return %arg0, %c0_i32 : i32, i32
  }
  func.func @transform_1(%arg0: i32) -> (i32, i32) {
    %c0_i32 = arith.constant 0 : i32
    %c0_i32_0 = arith.constant 0 : i32
    return %arg0, %c0_i32 : i32, i32
  }
}

</mosaic_0001>

<bundles_post_ra>
// kernel: pallas_cast.1
= control target key start
LH: loop header
LB: loop body
LE: loop exit
PB: predicated region body
PF: predicated region fallthrough
CT: control target
= control target key end

     0   :  { %v16_v0 = vlaneseq  ;;  %v133_v3 = vmov 1983009808   ;;  %v134_v5 = vmov 1966171168   ;;  %s154_s0 = inlined_call_operand.vmem [shape: f32[2,1024], index: 0, kind: input, shape index: {}]   ;;  %s155_s1 = inlined_call_operand.vmem [shape: bf16[2,1024], index: 1, kind: output, shape index: {}]  }
   0x1   :  { %v8_v1 = vld [vmem:[%s154_s0] sm:$0xff]  ;;  %v9_v2 = vld [vmem:[%s154_s0 + $0x8] sm:$0xff]  ;;  %v14_v4 = vunpack.c.l.s4 %v133_v3  ;;  %v75_v6 = vunpack.c.l.s4 %v134_v5 }
   0x2   :  { %v17_v7 = vshrl.u32 %v16_v0, 7  ;;  %v12_v8 = vcombine.high %v8_v1, %v8_v1  ;;  %v29_v10 = vcombine.high %v9_v2, %v9_v2 }
   0x3   :  { %v15_v9 = vunpack.c.0.s8 %v14_v4  ;;  %v76_v11 = vunpack.c.0.s8 %v75_v6 }
   0x5   :  { %v18_v12 = vsub.s32 %v15_v9, %v17_v7  ;;  %v79_v17 = vsub.s32 %v76_v11, %v17_v7 }
   0x7   :  { %v19_v13 = vrot.slane %v8_v1, %v18_v12  ;;  %v26_v14 = vrot.slane %v12_v8, %v18_v12  ;;  %v36_v15 = vrot.slane %v9_v2, %v18_v12  ;;  %v43_v16 = vrot.slane %v29_v10, %v18_v12 }
   0x9   :  { %v27_v18 = vcombine.high %v19_v13, %v19_v13  ;;  %v28_v19 = vcombine.high %v26_v14, %v26_v14  ;;  %v44_v20 = vcombine.high %v36_v15, %v36_v15  ;;  %v45_v21 = vcombine.high %v43_v16, %v43_v16 }
   0xb   :  { %v125_v22 = vpack.c.bf16 %v27_v18, %v19_v13  ;;  %v126_v23 = vpack.c.bf16 %v28_v19, %v26_v14  ;;  %v127_v24 = vpack.c.bf16 %v44_v20, %v36_v15  ;;  %v128_v25 = vpack.c.bf16 %v45_v21, %v43_v16 }
   0xd   :  { %v80_v26 = vrot.slane %v125_v22, %v79_v17  ;;  %v87_v27 = vrot.slane %v126_v23, %v79_v17  ;;  %v94_v28 = vrot.slane %v127_v24, %v79_v17  ;;  %v101_v29 = vrot.slane %v128_v25, %v79_v17 }
   0xf   :  { %v102_v30 = vcombine.low %v80_v26, %v87_v27  ;;  %v103_v31 = vcombine.low %v94_v28, %v101_v29 }
  0x11   :  { %v110_v32 = vrot.slane %v102_v30, %v79_v17  ;;  %v117_v33 = vrot.slane %v103_v31, %v79_v17 }
  0x13   :  { %v118_v34 = vcombine.low %v110_v32, %v117_v33 }
  0x15   :  { %120 = vst [vmem:[%s155_s1] sm:$0xff] %v118_v34 }

</bundles_post_ra>
